<compile_context>
chip_gen: v6e
topology: v6e:2x2x1
jax: 0.10.0
libtpu: 0.0.40
codegen_flags: <defaults>
</compile_context>

<pallas_src>
import functools

import jax
import jax.numpy as jnp
from jax.experimental import pallas as pl
from jax.experimental.pallas import tpu as pltpu

LANE = 128      # TPU lane width (last dim)
SUBLANE = 8     # TPU sublane width (second-to-last dim, f32)
MAX_TM = 512    # batch-tile cap (per review: 512-row M tiles ~85% of roofline)


def _round_up(x, m):
    return (x + m - 1) // m * m


# ----------------------------- fused Pallas kernel -------------------------- #

def _make_fused_kernel(n_out, store_h1, store_h2):
    """Build the fused 3-layer kernel.

    relu(x@w1+b1) -> relu(.@w2+b2) -> log_softmax(.@w3+b3)

    Weights arrive as bf16; matmuls accumulate f32 on the MXU; elementwise math
    stays f32.  Padded classifier lanes are masked to -1e30 before log-softmax
    so the zero padding cannot perturb the denominator.  h1/h2 stores are
    compiled in only when requested (static flags).
    """

    def kernel(x_ref, w1_ref, w2_ref, w3_ref, b_ref, *out_refs):
        idx = 0
        x = x_ref[...].astype(jnp.bfloat16)
        b1 = b_ref[0:1, :]          # packed biases: row r = layer-r bias (f32)
        b2 = b_ref[1:2, :]
        b3 = b_ref[2:3, :]

        h1 = jnp.dot(x, w1_ref[...], preferred_element_type=jnp.float32) + b1
        h1 = jnp.maximum(h1, 0.0)
        if store_h1:
            out_refs[idx][...] = h1.astype(out_refs[idx].dtype)
            idx += 1

        h2 = jnp.dot(h1.astype(jnp.bfloat16), w2_ref[...],
                     preferred_element_type=jnp.float32) + b2
        h2 = jnp.maximum(h2, 0.0)
        if store_h2:
            out_refs[idx][...] = h2.astype(out_refs[idx].dtype)
            idx += 1

        logits = jnp.dot(h2.astype(jnp.bfloat16), w3_ref[...],
                         preferred_element_type=jnp.float32) + b3
        lane = jax.lax.broadcasted_iota(jnp.int32, logits.shape, dimension=1)
        valid = lane < n_out
        logits = jnp.where(valid, logits, jnp.float32(-1e30))
        m = jnp.max(logits, axis=-1, keepdims=True)
        z = logits - m
        lse = jnp.log(jnp.sum(jnp.where(valid, jnp.exp(z), 0.0),
                              axis=-1, keepdims=True))
        out_refs[idx][...] = (z - lse).astype(out_refs[idx].dtype)

    return kernel


def _build_fused_forward(batch, fea_dim, dims_out, n_out, store_h1, store_h2):
    """Build a jitted fused forward for a fixed (batch, outputs-needed) config."""
    K = fea_dim                               # true feature width (no K padding)
    Np = LANE                                 # padded layer width (all <= 128 here)

    # Batch tiling: big tiles (per-step overhead ~0.35us, 512-row tiles ~85% of
    # HBM roofline), and >=2 grid points once there is enough work so the
    # "parallel" axis shards across v7x's two TensorCores.
    Mp0 = _round_up(max(batch, SUBLANE), SUBLANE)
    if Mp0 < 256:
        tm = Mp0
    else:
        tm = min(MAX_TM, _round_up((Mp0 + 1) // 2, SUBLANE))
    grid_m = -(-Mp0 // tm)
    Mp = grid_m * tm                          # padded batch rows (== batch at batch=8)

    n_outs = 1 + int(store_h1) + int(store_h2)

    out_shape = []
    out_specs = []
    for _ in range(n_outs):
        out_shape.append(jax.ShapeDtypeStruct((Mp, Np), jnp.float32))
        out_specs.append(pl.BlockSpec((tm, Np), lambda i: (i, 0)))

    kernel = _make_fused_kernel(n_out, store_h1, store_h2)

    # Advisory cost model: 3 matmuls + exp/log of the softmax.
    flops = 2 * Mp * (K * Np + 2 * Np * Np)
    transcendentals = Mp * (Np + 1)
    weight_bytes = 2 * (K * Np + 2 * Np * Np)            # bf16 weights
    bytes_accessed = (Mp * K * 4 + weight_bytes + SUBLANE * Np * 4
                      + n_outs * Mp * Np * 4)
    cost = pl.CostEstimate(flops=flops, transcendentals=transcendentals,
                           bytes_accessed=bytes_accessed)

    # VMEM plan: resident bf16 weights + double-buffered x / output tiles.
    # Only raise the scoped limit when the estimate would exceed the default
    # (matters at real kaldi widths, not at these toy sizes).
    vmem_bytes = (2 * tm * K * 4 + weight_bytes + SUBLANE * Np * 4
                  + n_outs * 2 * tm * Np * 4)
    vmem_limit = int(vmem_bytes * 3 // 2) if vmem_bytes > (12 << 20) else None

    fused = pl.pallas_call(
        kernel,
        out_shape=tuple(out_shape),
        grid=(grid_m,),
        in_specs=[
            pl.BlockSpec((tm, K), lambda i: (i, 0)),        # x tile per grid step
            pl.BlockSpec((K, Np), lambda i: (0, 0)),        # w1 resident (bf16)
            pl.BlockSpec((Np, Np), lambda i: (0, 0)),       # w2 resident (bf16)
            pl.BlockSpec((Np, Np), lambda i: (0, 0)),       # w3 resident (bf16)
            pl.BlockSpec((SUBLANE, Np), lambda i: (0, 0)),  # packed biases (1 DMA)
        ],
        out_specs=tuple(out_specs),
        compiler_params=pltpu.CompilerParams(
            # batch axis is data-parallel -> shards across v7x's 2 TensorCores
            # and software-pipelines activation DMA when batch grows.
            dimension_semantics=("parallel",),
            vmem_limit_bytes=vmem_limit,
        ),
        cost_estimate=cost,
    )

    d1, d2 = dims_out[0], dims_out[1]

    @jax.jit
    def fwd(x, w1, w2, w3, b_stack):
        x32 = x.astype(jnp.float32)
        if Mp > batch:                       # row pad only when actually needed
            x32 = jnp.pad(x32, ((0, Mp - batch), (0, 0)))
        raw = fused(x32, w1, w2, w3, b_stack)
        res = []
        i = 0
        # Slices to the true shapes stay inside this single jit (one dispatch).
        if store_h1:
            res.append(raw[i][:batch, :d1]); i += 1
        if store_h2:
            res.append(raw[i][:batch, :d2]); i += 1
        res.append(raw[i][:batch, :n_out])
        return tuple(res)

    return fwd


# --------------------------- model (graph executor) ------------------------- #

class PallasModel:
    """Mirrors model.__init__ / model.forward of the reference module.

    __init__ parses the config's model section into computation_lst and builds
    one Linear(+activation) block per computation from arch_info.  forward
    walks the computation chain (fused into one Pallas kernel) and fills an
    output_dict keyed by tensor names, exactly like the reference.
    """

    def __init__(self, fea_dim, arch_info, key):
        hidden = arch_info["MLP_dnn_lay"]          # e.g. [32, 32]
        n_out = arch_info["MLP_num_classes"]       # classifier output dim

        # config['model']['model'] equivalent: out_name, op, arch, input tensor
        model_sec = [
            ("out_dnn1", "MLP", "architecture1", "mfcc"),
            ("out_dnn2", "MLP", "architecture2", "out_dnn1"),
            ("out_pred", "MLP_softmax", "architecture3", "out_dnn2"),
        ]
        dims_in = [fea_dim, hidden[0], hidden[1]]
        dims_out = [hidden[0], hidden[1], n_out]
        acts = ["relu", "relu", "log_softmax"]

        Np = LANE
        assert max(dims_out) <= Np, (
            "TODO(synk): layer widths > 128 need wider (256-multiple) N tiles")

        nns = {}
        computation_lst = []
        w_pad = []
        b_pad = []
        for idx, ((out_name, op_id, inp1, inp2), din, dout, act) in enumerate(
                zip(model_sec, dims_in, dims_out, acts)):
            cid = f"{out_name}:_:{op_id}:_:{inp1}:_:{inp2}"
            key, kw, kb = jax.random.split(key, 3)
            w = (jax.random.normal(kw, (din, dout), jnp.float32)
                 * (1.0 / jnp.sqrt(jnp.float32(din))))
            b = jax.random.normal(kb, (1, dout), jnp.float32) * 0.01

            # Parameters are stored in bf16 (what the kernel consumes); the
            # reference uses the identical (bf16-rounded) values in f32.
            w_bf16 = w.astype(jnp.bfloat16)
            nns[cid] = (w_bf16.astype(jnp.float32), b, act)
            computation_lst.append([out_name, inp1, inp2, cid])

            # Lane-dense, zero-padded bf16 weights.  Layer 0 keeps its true
            # input width (no K padding -> no x padding on the host side);
            # deeper layers take the 128-wide padded activations (their padded
            # rows are zero so the relu chain stays exact).
            din_p = fea_dim if idx == 0 else Np
            w_pad.append(jnp.zeros((din_p, Np), jnp.bfloat16)
                         .at[:din, :dout].set(w_bf16))
            b_pad.append(jnp.zeros((Np,), jnp.float32).at[:dout].set(b[0]))

        # Pack the three biases into one (8, 128) f32 tile -> a single bias DMA.
        b_stack = jnp.zeros((SUBLANE, LANE), jnp.float32)
        for r, bp in enumerate(b_pad):
            b_stack = b_stack.at[r, :].set(bp)

        self.nns = nns
        self.computation_lst = computation_lst
        self.fea_dim = fea_dim
        self.dims_out = tuple(dims_out)
        self.n_out = n_out
        self.w_pad = w_pad
        self.b_stack = b_stack
        self._fwd_cache = {}

    def forward(self, features, needed=None):
        # features: dict of name -> [batch, feat_dim] arrays (fea_to_cuda no-op).
        # `needed` restricts which chain outputs are materialized; default is
        # all of them (reference output_dict semantics).  Dropping the
        # intermediates removes ~2/3 of output writeback traffic.
        output_dict = dict(features)
        names = [c[0] for c in self.computation_lst]
        if needed is None:
            needed = tuple(names)
        store_h1 = names[0] in needed
        store_h2 = names[1] in needed

        in_name = self.computation_lst[0][2]       # "mfcc"
        x = output_dict[in_name]
        batch = x.shape[0]

        cache_key = (batch, store_h1, store_h2)
        fwd = self._fwd_cache.get(cache_key)
        if fwd is None:
            fwd = _build_fused_forward(batch, self.fea_dim, self.dims_out,
                                       self.n_out, store_h1, store_h2)
            self._fwd_cache[cache_key] = fwd

        outs = fwd(x, self.w_pad[0], self.w_pad[1], self.w_pad[2], self.b_stack)
        i = 0
        if store_h1:
            output_dict[names[0]] = outs[i]; i += 1
        if store_h2:
            output_dict[names[1]] = outs[i]; i += 1
        output_dict[names[2]] = outs[i]
        self.output_dict = output_dict
        return output_dict

    # TODO(synk): compute_costs only prints in the reference; no loss graph to port.


# ----------------------------------- driver --------------------------------- #

def _ref_forward(m, features):
    """Pure-JAX reference of the same computation chain (for sanity check)."""
    out = dict(features)
    for out_name, _, inp_name, cid in m.computation_lst:
        w, b, act = m.nns[cid]
        y = out[inp_name].astype(jnp.float32) @ w + b
        if act == "relu":
            y = jnp.maximum(y, 0.0)
        else:
            y = jax.nn.log_softmax(y, axis=-1)
        out[out_name] = y
    return out


if __name__ == "__main__":
    key = jax.random.PRNGKey(0)
    batch, fea_dim = 8, 32
    arch_info = {"MLP_dnn_lay": [32, 32], "MLP_num_classes": 16}

    key, kx, km = jax.random.split(key, 3)
    features = {"mfcc": jax.random.normal(kx, (batch, fea_dim), jnp.float32)}

    m = PallasModel(fea_dim, arch_info, km)

    # Full output_dict (reference semantics).
    out = m.forward(features)
    pred = out["out_pred"]
    jax.block_until_ready(pred)

    ref = _ref_forward(m, features)
    assert pred.shape == (batch, arch_info["MLP_num_classes"])
    # bf16 matmul inputs (f32 accumulation) vs. the f32 reference -> loosen tol.
    for name in ("out_dnn1", "out_dnn2", "out_pred"):
        assert out[name].shape == ref[name].shape
        assert jnp.allclose(out[name], ref[name], atol=5e-2, rtol=5e-2), name

    # Prediction-only path (skips h1/h2 writebacks entirely).
    out_pred_only = m.forward(features, needed=("out_pred",))
    jax.block_until_ready(out_pred_only["out_pred"])
    assert "out_dnn1" not in out_pred_only and "out_dnn2" not in out_pred_only
    assert jnp.allclose(out_pred_only["out_pred"], ref["out_pred"],
                        atol=5e-2, rtol=5e-2)

    print("KERNEL_OK")
</pallas_src>

<mosaic_0001>
module attributes {stable_mosaic.version = 11 : i64} {
  func.func @kernel(%arg0: i32, %arg1: memref<8x32xf32, #tpu.memory_space<vmem>>, %arg2: memref<32x128xbf16, #tpu.memory_space<vmem>>, %arg3: memref<128x128xbf16, #tpu.memory_space<vmem>>, %arg4: memref<128x128xbf16, #tpu.memory_space<vmem>>, %arg5: memref<8x128xf32, #tpu.memory_space<vmem>>, %arg6: memref<8x128xf32, #tpu.memory_space<vmem>>, %arg7: memref<8x128xf32, #tpu.memory_space<vmem>>, %arg8: memref<8x128xf32, #tpu.memory_space<vmem>>) attributes {dimension_semantics = [#tpu.dimension_semantics<parallel>], iteration_bounds = array<i64: 1>, scalar_prefetch = 0 : i64, scratch_operands = 0 : i64, tpu.core_type = #tpu.core_type<tc>, window_params = [{transform_indices = @transform_0, window_bounds = array<i64: 8, 32>}, {pipeline_mode = #tpu.pipeline_mode<synchronous>, transform_indices = @transform_1, window_bounds = array<i64: 32, 128>}, {pipeline_mode = #tpu.pipeline_mode<synchronous>, transform_indices = @transform_2, window_bounds = array<i64: 128, 128>}, {pipeline_mode = #tpu.pipeline_mode<synchronous>, transform_indices = @transform_3, window_bounds = array<i64: 128, 128>}, {pipeline_mode = #tpu.pipeline_mode<synchronous>, transform_indices = @transform_4, window_bounds = array<i64: 8, 128>}, {transform_indices = @transform_5, window_bounds = array<i64: 8, 128>}, {transform_indices = @transform_6, window_bounds = array<i64: 8, 128>}, {transform_indices = @transform_7, window_bounds = array<i64: 8, 128>}]} {
    %c0 = arith.constant 0 : index
    %c0_0 = arith.constant 0 : index
    %0 = vector.load %arg1[%c0, %c0_0] : memref<8x32xf32, #tpu.memory_space<vmem>>, vector<8x32xf32>
    %1 = arith.truncf %0 : vector<8x32xf32> to vector<8x32xbf16>
    %c0_1 = arith.constant 0 : index
    %c0_2 = arith.constant 0 : index
    %2 = vector.load %arg5[%c0_1, %c0_2] : memref<8x128xf32, #tpu.memory_space<vmem>>, vector<1x128xf32>
    %c1 = arith.constant 1 : index
    %c0_3 = arith.constant 0 : index
    %3 = vector.load %arg5[%c1, %c0_3] : memref<8x128xf32, #tpu.memory_space<vmem>>, vector<1x128xf32>
    %c2 = arith.constant 2 : index
    %c0_4 = arith.constant 0 : index
    %4 = vector.load %arg5[%c2, %c0_4] : memref<8x128xf32, #tpu.memory_space<vmem>>, vector<1x128xf32>
    %c0_5 = arith.constant 0 : index
    %c0_6 = arith.constant 0 : index
    %5 = vector.load %arg2[%c0_5, %c0_6] : memref<32x128xbf16, #tpu.memory_space<vmem>>, vector<32x128xbf16>
    %cst = arith.constant dense<0.000000e+00> : vector<8x128xf32>
    %6 = tpu.matmul %1, %5, %cst {dimension_numbers = #tpu.dot_dimension_numbers<[1], [0], [0], [1], [0, 0, 1, 1], [], []>} : vector<8x32xbf16>, vector<32x128xbf16>, vector<8x128xf32> -> vector<8x128xf32>
    %7 = vector.broadcast %2 : vector<1x128xf32> to vector<8x128xf32>
    %8 = arith.addf %6, %7 : vector<8x128xf32>
    %cst_7 = arith.constant 0.000000e+00 : f32
    %9 = vector.broadcast %cst_7 : f32 to vector<8x128xf32>
    %10 = arith.maximumf %8, %9 : vector<8x128xf32>
    %c0_8 = arith.constant 0 : index
    %c0_9 = arith.constant 0 : index
    %11 = vector.load %arg6[%c0_8, %c0_9] : memref<8x128xf32, #tpu.memory_space<vmem>>, vector<8x128xf32>
    tpu.vector_store %arg6[%c0_8, %c0_9], %10 {strides = array<i32>} : memref<8x128xf32, #tpu.memory_space<vmem>>, vector<8x128xf32>,
    %12 = arith.truncf %10 : vector<8x128xf32> to vector<8x128xbf16>
    %c0_10 = arith.constant 0 : index
    %c0_11 = arith.constant 0 : index
    %13 = vector.load %arg3[%c0_10, %c0_11] : memref<128x128xbf16, #tpu.memory_space<vmem>>, vector<128x128xbf16>
    %cst_12 = arith.constant dense<0.000000e+00> : vector<8x128xf32>
    %14 = tpu.matmul %12, %13, %cst_12 {dimension_numbers = #tpu.dot_dimension_numbers<[1], [0], [0], [1], [0, 0, 1, 1], [], []>} : vector<8x128xbf16>, vector<128x128xbf16>, vector<8x128xf32> -> vector<8x128xf32>
    %15 = vector.broadcast %3 : vector<1x128xf32> to vector<8x128xf32>
    %16 = arith.addf %14, %15 : vector<8x128xf32>
    %cst_13 = arith.constant 0.000000e+00 : f32
    %17 = vector.broadcast %cst_13 : f32 to vector<8x128xf32>
    %18 = arith.maximumf %16, %17 : vector<8x128xf32>
    %c0_14 = arith.constant 0 : index
    %c0_15 = arith.constant 0 : index
    %19 = vector.load %arg7[%c0_14, %c0_15] : memref<8x128xf32, #tpu.memory_space<vmem>>, vector<8x128xf32>
    tpu.vector_store %arg7[%c0_14, %c0_15], %18 {strides = array<i32>} : memref<8x128xf32, #tpu.memory_space<vmem>>, vector<8x128xf32>,
    %20 = arith.truncf %18 : vector<8x128xf32> to vector<8x128xbf16>
    %c0_16 = arith.constant 0 : index
    %c0_17 = arith.constant 0 : index
    %21 = vector.load %arg4[%c0_16, %c0_17] : memref<128x128xbf16, #tpu.memory_space<vmem>>, vector<128x128xbf16>
    %cst_18 = arith.constant dense<0.000000e+00> : vector<8x128xf32>
    %22 = tpu.matmul %20, %21, %cst_18 {dimension_numbers = #tpu.dot_dimension_numbers<[1], [0], [0], [1], [0, 0, 1, 1], [], []>} : vector<8x128xbf16>, vector<128x128xbf16>, vector<8x128xf32> -> vector<8x128xf32>
    %23 = vector.broadcast %4 : vector<1x128xf32> to vector<8x128xf32>
    %24 = arith.addf %22, %23 : vector<8x128xf32>
    %25 = tpu.iota {dimensions = array<i32: 1>} : vector<8x128xi32>
    %c16_i32 = arith.constant 16 : i32
    %26 = vector.broadcast %c16_i32 : i32 to vector<8x128xi32>
    %27 = arith.cmpi slt, %25, %26 : vector<8x128xi32>
    %cst_19 = arith.constant -1.000000e+30 : f32
    %28 = vector.broadcast %cst_19 : f32 to vector<8x128xf32>
    %29 = arith.select %27, %24, %28 : vector<8x128xi1>, vector<8x128xf32>
    %cst_20 = arith.constant dense<0xFF800000> : vector<8xf32>
    %30 = vector.multi_reduction <maximumf>, %29, %cst_20 [1] : vector<8x128xf32> to vector<8xf32>
    %31 = vector.shape_cast %30 : vector<8xf32> to vector<8x1xf32>
    %32 = vector.broadcast %31 : vector<8x1xf32> to vector<8x128xf32>
    %33 = arith.subf %29, %32 : vector<8x128xf32>
    %34 = math.exp %33 : vector<8x128xf32>
    %cst_21 = arith.constant 0.000000e+00 : f32
    %35 = vector.broadcast %cst_21 : f32 to vector<8x128xf32>
    %36 = arith.select %27, %34, %35 : vector<8x128xi1>, vector<8x128xf32>
    %cst_22 = arith.constant dense<0.000000e+00> : vector<8xf32>
    %37 = vector.multi_reduction <add>, %36, %cst_22 [1] : vector<8x128xf32> to vector<8xf32>
    %38 = vector.shape_cast %37 : vector<8xf32> to vector<8x1xf32>
    %39 = math.log %38 : vector<8x1xf32>
    %40 = vector.broadcast %39 : vector<8x1xf32> to vector<8x128xf32>
    %41 = arith.subf %33, %40 : vector<8x128xf32>
    %c0_23 = arith.constant 0 : index
    %c0_24 = arith.constant 0 : index
    %42 = vector.load %arg8[%c0_23, %c0_24] : memref<8x128xf32, #tpu.memory_space<vmem>>, vector<8x128xf32>
    tpu.vector_store %arg8[%c0_23, %c0_24], %41 {strides = array<i32>} : memref<8x128xf32, #tpu.memory_space<vmem>>, vector<8x128xf32>,
    return
  }
  func.func @transform_0(%arg0: i32) -> (i32, i32) {
    %c0_i32 = arith.constant 0 : i32
    %c0_i32_0 = arith.constant 0 : i32
    return %arg0, %c0_i32 : i32, i32
  }
  func.func @transform_1(%arg0: i32) -> (i32, i32) {
    %c0_i32 = arith.constant 0 : i32
    %c0_i32_0 = arith.constant 0 : i32
    %c0_i32_1 = arith.constant 0 : i32
    return %c0_i32, %c0_i32_0 : i32, i32
  }
  func.func @transform_2(%arg0: i32) -> (i32, i32) {
    %c0_i32 = arith.constant 0 : i32
    %c0_i32_0 = arith.constant 0 : i32
    %c0_i32_1 = arith.constant 0 : i32
    return %c0_i32, %c0_i32_0 : i32, i32
  }
  func.func @transform_3(%arg0: i32) -> (i32, i32) {
    %c0_i32 = arith.constant 0 : i32
    %c0_i32_0 = arith.constant 0 : i32
    %c0_i32_1 = arith.constant 0 : i32
    return %c0_i32, %c0_i32_0 : i32, i32
  }
  func.func @transform_4(%arg0: i32) -> (i32, i32) {
    %c0_i32 = arith.constant 0 : i32
    %c0_i32_0 = arith.constant 0 : i32
    %c0_i32_1 = arith.constant 0 : i32
    return %c0_i32, %c0_i32_0 : i32, i32
  }
  func.func @transform_5(%arg0: i32) -> (i32, i32) {
    %c0_i32 = arith.constant 0 : i32
    %c0_i32_0 = arith.constant 0 : i32
    return %arg0, %c0_i32 : i32, i32
  }
  func.func @transform_6(%arg0: i32) -> (i32, i32) {
    %c0_i32 = arith.constant 0 : i32
    %c0_i32_0 = arith.constant 0 : i32
    return %arg0, %c0_i32 : i32, i32
  }
  func.func @transform_7(%arg0: i32) -> (i32, i32) {
    %c0_i32 = arith.constant 0 : i32
    %c0_i32_0 = arith.constant 0 : i32
    return %arg0, %c0_i32 : i32, i32
  }
}

</mosaic_0001>

<bundles_post_ra>
// kernel: fwd.1
= control target key start
LH: loop header
LB: loop body
LE: loop exit
PB: predicated region body
PF: predicated region fallthrough
CT: control target
= control target key end

     0   :  { %13 = vsyncpa [#allocation3], 0  ;;  %s845_s0 = inlined_call_operand.hbm [shape: f32[8,32], index: 0, kind: input, shape index: {}]   ;;  %s846_s1 = inlined_call_operand.hbm [shape: bf16[32,128], index: 1, kind: input, shape index: {}]   ;;  %s847_s2 = inlined_call_operand.hbm [shape: bf16[128,128], index: 2, kind: input, shape index: {}]   ;;  %s848_s3 = inlined_call_operand.hbm [shape: bf16[128,128], index: 3, kind: input, shape index: {}]   ;;  %s849_s4 = inlined_call_operand.hbm [shape: f32[8,128], index: 4, kind: input, shape index: {}]   ;;  %s850_s5 = inlined_call_operand.hbm [shape: f32[8,128], index: 5, kind: output, shape index: {0}]   ;;  %s851_s6 = inlined_call_operand.hbm [shape: f32[8,128], index: 6, kind: output, shape index: {1}]   ;;  %s852_s7 = inlined_call_operand.hbm [shape: f32[8,128], index: 7, kind: output, shape index: {2}]  }
   0x1   :  { %14 = vsyncpa [#allocation6], 0 }
   0x2   :  { %15 = vsyncpa [#allocation9], 0 }
   0x3   :  { %16 = vsyncpa [#allocation4], 0 }
   0x4   :  { %17 = vsyncpa [#allocation13], 0  ;;  %s736_s24 = smov [#allocation5]  }
   0x5   :  { %s33_s25 = sshll.u32 %s736_s24, 4  ;;  %s34_s25 = int_to_ptr.vmem [resolvable:$true] %s33_s25 }
   0x6   :  { %s574_s26 = scalar_lea.vmem %s34_s25, 256  ;;  %p579_p1 = scmp.lt.s32.totalorder %s34_s25, %s34_s25 }
   0x7   :  { %p575_p0 = scmp.ne.s32.totalorder %s34_s25, %s574_s26  ;;  %p580_p2 = scmp.lt.s32.totalorder %s574_s26, %s574_s26 }
   0x9   :  { %p581_p3 = por %p580_p2, %p579_p1 }
   0xb   :  { %p582_p4 = pnand %p581_p3, %p575_p0 }
   0xd   :  { %585 = shalt.err (!%p582_p4)
}
   0xe   :  { %s737_s27 = smov 64   ;;  %s738_s28 = smov 4  }
   0xf   :  { %39 = dma.hbm_to_vmem [thread:$0]  %s846_s1, 256, %s34_s25, [#allocation6], %s737_s27, %s737_s27, %s738_s28  }
  0x10   :  { %s739_s8 = smov [#allocation8]   ;;  %s740_s10 = smov [#allocation2]  }
  0x11   :  { %s57_s9 = sshll.u32 %s739_s8, 4  ;;  %s24_s11 = sshll.u32 %s740_s10, 4  ;;  %s58_s9 = int_to_ptr.vmem [resolvable:$true] %s57_s9  ;;  %s25_s11 = int_to_ptr.vmem [resolvable:$true] %s24_s11 }
  0x12   :  { %s594_s12 = scalar_lea.vmem %s58_s9, 1024  ;;  %p599_p6 = scmp.lt.s32.totalorder %s58_s9, %s58_s9 }
  0x13   :  { %p595_p5 = scmp.ne.s32.totalorder %s58_s9, %s594_s12  ;;  %p600_p7 = scmp.lt.s32.totalorder %s594_s12, %s594_s12 }
  0x15   :  { %p601_p8 = por %p600_p7, %p599_p6 }
  0x17   :  { %p602_p9 = pnand %p601_p8, %p595_p5 }
  0x19   :  { %605 = shalt.err (!%p602_p9)
}
  0x1a   :  { %63 = dma.hbm_to_vmem [thread:$0]  %s848_s3, 1024, %s58_s9, [#allocation9], %s737_s27, %s737_s27, %s738_s28  }
  0x1b   :  { %s614_s1 = scalar_lea.vmem %s25_s11, 128  ;;  %p619_p11 = scmp.lt.s32.totalorder %s25_s11, %s25_s11 }
  0x1c   :  { %p615_p10 = scmp.ne.s32.totalorder %s25_s11, %s614_s1  ;;  %p620_p12 = scmp.lt.s32.totalorder %s614_s1, %s614_s1 }
  0x1e   :  { %p621_p13 = por %p620_p12, %p619_p11 }
  0x20   :  { %p622_p0 = pnand %p621_p13, %p615_p10 }
  0x22   :  { %625 = shalt.err (!%p622_p0)
}
  0x23   :  { %27 = dma.hbm_to_vmem [thread:$0]  %s845_s0, 128, %s25_s11, [#allocation3]  }
  0x24   :  { %s741_s17 = smov [#allocation7]   ;;  %s742_s19 = smov [#allocation10]  }
  0x25   :  { %s45_s18 = sshll.u32 %s741_s17, 4  ;;  %s70_s20 = sshll.u32 %s742_s19, 4  ;;  %s46_s18 = int_to_ptr.vmem [resolvable:$true] %s45_s18  ;;  %s71_s20 = int_to_ptr.vmem [resolvable:$true] %s70_s20 }
  0x26   :  { %s634_s21 = scalar_lea.vmem %s46_s18, 1024  ;;  %p639_p2 = scmp.lt.s32.totalorder %s46_s18, %s46_s18 }
  0x27   :  { %p635_p1 = scmp.ne.s32.totalorder %s46_s18, %s634_s21  ;;  %p640_p3 = scmp.lt.s32.totalorder %s634_s21, %s634_s21 }
  0x29   :  { %p641_p4 = por %p640_p3, %p639_p2 }
  0x2b   :  { %p642_p5 = pnand %p641_p4, %p635_p1 }
  0x2d   :  { %645 = shalt.err (!%p642_p5)
}
  0x2e   :  { %51 = dma.hbm_to_vmem [thread:$0]  %s847_s2, 1024, %s46_s18, [#allocation6], %s737_s27, %s737_s27, %s738_s28  }
  0x2f   :  { %s654_s0 = scalar_lea.vmem %s71_s20, 128  ;;  %p659_p7 = scmp.lt.s32.totalorder %s71_s20, %s71_s20 }
  0x30   :  { %p655_p6 = scmp.ne.s32.totalorder %s71_s20, %s654_s0  ;;  %p660_p8 = scmp.lt.s32.totalorder %s654_s0, %s654_s0 }
  0x32   :  { %p661_p9 = por %p660_p8, %p659_p7 }
  0x34   :  { %p662_p10 = pnand %p661_p9, %p655_p6 }
  0x36   :  { %665 = shalt.err (!%p662_p10)
}
  0x37   :  { %73 = dma.hbm_to_vmem [thread:$0]  %s849_s4, 128, %s71_s20, [#allocation9]  }
  0x38   :  { %726 = dma.done.wait [#allocation3], 128  }
  0x39   :  { %727 = vsyncadd [#allocation3], 4294967168 }
  0x3a   :  { %728 = dma.done.wait [#allocation6], 1280  }
  0x3b   :  { %729 = vsyncadd [#allocation6], 4294966016 }
  0x3c   :  { %730 = dma.done.wait [#allocation9], 1152  }
  0x3d   :  { %731 = vsyncadd [#allocation9], 4294966144  ;;  %v743_v0 = vmov 0.0   ;;  %vm744_vm0 = vmmov 0   ;;  %v544_v1 = vld [vmem:[#allocation5 + $0x8] sm:$0xff]   ;;  %v545_v2 = vld [vmem:[#allocation5] sm:$0xff]   ;;  %v381_v37 = vlaneseq }
  0x3e   :  { %484 = vmatprep.subr.bf16.mxu0 %v743_v0  ;;  %488 = vmatprep.mubr.msk.bf16.mxu0 %vm744_vm0, %v743_v0  ;;  %v90_v3 = vld [vmem:[#allocation2] sm:$0xff]  ;;  %v546_v4 = vld [vmem:[#allocation7 + $0x38] sm:$0xff]   ;;  %v547_v6 = vld [vmem:[#allocation7 + $0x30] sm:$0xff]   ;;  %vm115_vm1 = vcmask 261120   ;;  %s745_s2 = smov [#allocation12]   ;;  %s746_s25 = smov [#allocation11]  }
  0x3f   :  { %492 = vmatprep.subr.bf16.mxu1 %v743_v0  ;;  %508 = vmatprep.mubr.msk.bf16.mxu1 %vm744_vm0, %v743_v0  ;;  %v91_v5 = vpack.c.bf16 %v90_v3, %v90_v3  ;;  %v548_v7 = vld [vmem:[#allocation7 + $0x28] sm:$0xff]   ;;  %v549_v8 = vld [vmem:[#allocation7 + $0x20] sm:$0xff]   ;;  %v550_v9 = vld [vmem:[#allocation7 + $0x18] sm:$0xff]   ;;  %v382_v38 = vand.u32 127, %v381_v37  ;;  %s413_s4 = sshll.u32 %s745_s2, 4  ;;  %s403_s26 = sshll.u32 %s746_s25, 4  ;;  %s414_s4 = int_to_ptr.vmem [resolvable:$true] %s413_s4  ;;  %s404_s26 = int_to_ptr.vmem [resolvable:$true] %s403_s26 }
  0x40   :  { %485 = vmatpush3.bf16.msra.mxu0 %v544_v1  ;;  %493 = vmatpush3.bf16.msra.mxu1 %v546_v4  ;;  %v551_v10 = vld [vmem:[#allocation7 + $0x10] sm:$0xff]   ;;  %v552_v11 = vld [vmem:[#allocation7 + $0x8] sm:$0xff]   ;;  %v553_v12 = vld [vmem:[#allocation7] sm:$0xff]   ;;  %s666_s27 = scalar_lea.vmem %s414_s4, 128  ;;  %p671_p12 = scmp.lt.s32.totalorder %s414_s4, %s414_s4 }
  0x41   :  { %486 = vmatprep.subr.bf16.mxu0 %v743_v0  ;;  %494 = vmatprep.subr.bf16.mxu1 %v743_v0  ;;  %v554_v13 = vld [vmem:[#allocation8 + $0x38] sm:$0xff]   ;;  %v555_v14 = vld [vmem:[#allocation8 + $0x30] sm:$0xff]   ;;  %v556_v15 = vld [vmem:[#allocation8 + $0x28] sm:$0xff]   ;;  %vm383_vm2 = vcmp.lt.s32.totalorder %v382_v38, 16  ;;  %p667_p11 = scmp.ne.s32.totalorder %s414_s4, %s666_s27  ;;  %p672_p13 = scmp.lt.s32.totalorder %s666_s27, %s666_s27 }
  0x42   :  { %v557_v16 = vld [vmem:[#allocation8 + $0x20] sm:$0xff]   ;;  %v558_v17 = vld [vmem:[#allocation8 + $0x18] sm:$0xff]   ;;  %v559_v18 = vld [vmem:[#allocation8 + $0x10] sm:$0xff]  }
  0x43   :  { %v441_v19 = vld [vmem:[#allocation10] ss:$0 sm:$0xff]  ;;  %v560_v27 = vld [vmem:[#allocation8 + $0x8] sm:$0xff]   ;;  %v445_v29 = vld [vmem:[#allocation10 + $0x1] ss:$0 sm:$0xff]  ;;  %p673_p0 = por %p672_p13, %p671_p12 }
  0x44   :  { %487 = vmatpush3.bf16.msra.mxu0 %v545_v2  ;;  %495 = vmatpush3.bf16.msra.mxu1 %v547_v6  ;;  %v561_v28 = vld [vmem:[#allocation8] sm:$0xff]  }
  0x45   :  { %512 = vmatprep.subr.bf16.mxu0 %v743_v0  ;;  %496 = vmatprep.subr.bf16.mxu1 %v743_v0  ;;  %v454_v39 = vld [vmem:[#allocation10 + $0x2] ss:$0 sm:$0xff]  ;;  %p674_p1 = pnand %p673_p0, %p667_p11 }
  0x47   :  { %489 = vmatmul.mubr.msk.bf16.vlgmr.msra.gmra.mxu0 %vm115_vm1, %v91_v5 }
  0x48   :  { %528 = vmatprep.mubr.msk.bf16.mxu0 %vm744_vm0, %v743_v0  ;;  %497 = vmatpush3.bf16.msra.mxu1 %v548_v7 }
  0x49   :  { %498 = vmatprep.subr.bf16.mxu1 %v743_v0  ;;  %513 = vmatpush3.bf16.msra.mxu0 %v554_v13 }
  0x4a   :  { %514 = vmatprep.subr.bf16.mxu0 %v743_v0 }
  0x4c   :  { %499 = vmatpush3.bf16.msra.mxu1 %v549_v8 }
  0x4d   :  { %500 = vmatprep.subr.bf16.mxu1 %v743_v0  ;;  %515 = vmatpush3.bf16.msra.mxu0 %v555_v14 }
  0x4e   :  { %516 = vmatprep.subr.bf16.mxu0 %v743_v0 }
  0x50   :  { %501 = vmatpush3.bf16.msra.mxu1 %v550_v9 }
  0x51   :  { %502 = vmatprep.subr.bf16.mxu1 %v743_v0  ;;  %517 = vmatpush3.bf16.msra.mxu0 %v556_v15 }
  0x52   :  { %518 = vmatprep.subr.bf16.mxu0 %v743_v0 }
  0x54   :  { %503 = vmatpush3.bf16.msra.mxu1 %v551_v10 }
  0x55   :  { %504 = vmatprep.subr.bf16.mxu1 %v743_v0  ;;  %519 = vmatpush3.bf16.msra.mxu0 %v557_v16 }
  0x56   :  { %520 = vmatprep.subr.bf16.mxu0 %v743_v0 }
  0x58   :  { %505 = vmatpush3.bf16.msra.mxu1 %v552_v11 }
  0x59   :  { %506 = vmatprep.subr.bf16.mxu1 %v743_v0  ;;  %521 = vmatpush3.bf16.msra.mxu0 %v558_v17 }
  0x5a   :  { %522 = vmatprep.subr.bf16.mxu0 %v743_v0 }
  0x5c   :  { %507 = vmatpush3.bf16.msra.mxu1 %v553_v12 }
  0x5d   :  { %523 = vmatpush3.bf16.msra.mxu0 %v559_v18 }
  0x5e   :  { %524 = vmatprep.subr.bf16.mxu0 %v743_v0 }
  0x61   :  { %525 = vmatpush3.bf16.msra.mxu0 %v560_v27 }
  0x62   :  { %526 = vmatprep.subr.bf16.mxu0 %v743_v0 }
  0x65   :  { %527 = vmatpush3.bf16.msra.mxu0 %v561_v28 }
 0x107   :  { %v153_v20 = vpop.f32.mrf.mxu0 }
 0x108   :  { %v154_v21 = vadd.f32 %v441_v19, %v153_v20 }
 0x109   :  { %v490_v22 = vpop.f32.mrf.mxu0 }
 0x10a   :  { %v159_v23 = vmax.f32 %v154_v21, 0.0 }
 0x10b   :  { %v156_v24 = vpop.f32.mrf.mxu0 }
 0x10c   :  { %v161_v25 = vpack.c.bf16 %v159_v23, %v159_v23  ;;  %160 = vst [vmem:[#allocation11] sm:$0xff] %v159_v23 }
 0x10d   :  { %v491_v26 = vpop.f32.mrf.mxu0 }
 0x10e   :  { %509 = vmatmul.mubr.bf16.vlgmr.msra.gmra.mxu1 %v161_v25 }
 0x1ce   :  { %v264_v30 = vpop.f32.mrf.mxu1 }
 0x1cf   :  { %v265_v31 = vadd.f32 %v445_v29, %v264_v30 }
 0x1d0   :  { %v510_v32 = vpop.f32.mrf.mxu1 }
 0x1d1   :  { %v270_v33 = vmax.f32 %v265_v31, 0.0 }
 0x1d2   :  { %v267_v34 = vpop.f32.mrf.mxu1 }
 0x1d3   :  { %v272_v35 = vpack.c.bf16 %v270_v33, %v270_v33  ;;  %271 = vst [vmem:[#allocation12] sm:$0xff] %v270_v33 }
 0x1d4   :  { %v511_v36 = vpop.f32.mrf.mxu1 }
 0x1d5   :  { %529 = vmatmul.mubr.bf16.vlgmr.msra.gmra.mxu0 %v272_v35 }
 0x295   :  { %v375_v40 = vpop.f32.mrf.mxu0 }
 0x296   :  { %v376_v41 = vadd.f32 %v454_v39, %v375_v40 }
 0x297   :  { %v530_v42 = vpop.f32.mrf.mxu0 }
 0x298   :  { %v384_v43 = vsel %vm383_vm2, %v376_v41, -1e+30 }
 0x299   :  { %385 = vmax.xlane.f32.xlu0 %v384_v43  ;;  %v378_v44 = vpop.f32.mrf.mxu0 }
 0x29b   :  { %v531_v45 = vpop.f32.mrf.mxu0 }
 0x322   :  { %v386_v46 = vpop.xlane.xlu0 %385 }
 0x323   :  { %v387_v47 = vsub.f32 %v384_v43, %v386_v46 }
 0x325   :  { %v388_v48 = vmul.f32 1.442695, %v387_v47 }
 0x327   :  { %562 = vpow2.f32 %v388_v48 }
 0x334   :  { %v563_v49 = vpop.eup %562 }
 0x335   :  { %v390_v50 = vsel %vm383_vm2, %v563_v49, 0.0 }
 0x336   :  { %391 = vadd.xlane.f32.xlu0 %v390_v50 }
 0x337   :  { %677 = shalt.err (!%p674_p1)
}
 0x338   :  { %416 = dma.vmem_to_hbm [thread:$0]  %s414_s4, 128, %s851_s6, [#allocation13]  }
 0x339   :  { %s686_s30 = scalar_lea.vmem %s404_s26, 128  ;;  %p691_p3 = scmp.lt.s32.totalorder %s404_s26, %s404_s26 }
 0x33a   :  { %p687_p2 = scmp.ne.s32.totalorder %s404_s26, %s686_s30  ;;  %p692_p4 = scmp.lt.s32.totalorder %s686_s30, %s686_s30 }
 0x33c   :  { %p693_p5 = por %p692_p4, %p691_p3 }
 0x33e   :  { %p694_p6 = pnand %p693_p5, %p687_p2 }
 0x340   :  { %697 = shalt.err (!%p694_p6)
}
 0x341   :  { %406 = dma.vmem_to_hbm [thread:$0]  %s404_s26, 128, %s850_s5, [#allocation4]  }
 0x342   :  { %s747_s10 = smov [#allocation14]  }
 0x343   :  { %s423_s11 = sshll.u32 %s747_s10, 4  ;;  %s424_s11 = int_to_ptr.vmem [resolvable:$true] %s423_s11 }
 0x344   :  { %s706_s6 = scalar_lea.vmem %s424_s11, 128  ;;  %p711_p8 = scmp.lt.s32.totalorder %s424_s11, %s424_s11 }
 0x345   :  { %p707_p7 = scmp.ne.s32.totalorder %s424_s11, %s706_s6  ;;  %p712_p9 = scmp.lt.s32.totalorder %s706_s6, %s706_s6 }
 0x347   :  { %p713_p10 = por %p712_p9, %p711_p8 }
 0x349   :  { %p714_p11 = pnand %p713_p10, %p707_p7 }
 0x3bf   :  { %v392_v51 = vpop.xlane.xlu0 %391 }
 0x3c0   :  { %564 = vlog2.f32 %v392_v51 }
 0x3cd   :  { %v565_v52 = vpop.eup %564 }
 0x3ce   :  { %v394_v53 = vmul.f32 0.6931472, %v565_v52 }
 0x3d0   :  { %v395_v54 = vsub.f32 %v387_v47, %v394_v53 }
 0x3d2   :  { %396 = vst [vmem:[#allocation14] sm:$0xff] %v395_v54 }
 0x3d3   :  { %717 = shalt.err (!%p714_p11)
}
 0x3d4   :  { %426 = dma.vmem_to_hbm [thread:$0]  %s424_s11, 128, %s852_s7, [#allocation13]  }
 0x3d5   :  { %732 = dma.done.wait [#allocation4], 128  }
 0x3d6   :  { %733 = vsyncadd [#allocation4], 4294967168 }
 0x3d7   :  { %734 = dma.done.wait [#allocation13], 256  }
 0x3d8   :  { %735 = vsyncadd [#allocation13], 4294967040 }
 0x3d9   :  { %436 = vsyncpa [#allocation3], 1 }
 0x3da   :  { %437 = vsyncpa [#allocation6], 1 }
 0x3db   :  { %438 = vsyncpa [#allocation9], 1 }
 0x3dc   :  { %439 = vsyncpa [#allocation4], 1 }
 0x3dd   :  { %440 = vsyncpa [#allocation13], 1 }

</bundles_post_ra>
